<compile_context>
chip_gen: v7x
topology: tpu7x:2x2x1
jax: 0.10.0
libtpu: 0.0.40
codegen_flags: <defaults>
</compile_context>

<pallas_src>
import jax
import jax.numpy as jnp
import numpy as np
from jax.experimental import pallas as pl
from jax.experimental.pallas import tpu as pltpu


def _self_attn_kernel(gamma_ref, x_ref, w_ref, b_ref, out_ref):
    """One grid step processes a (bm_tile, C, N) block of B*T slices, channel-major."""
    K, C, N = x_ref.shape
    gamma = gamma_ref[0]
    w_cat = w_ref[...]                  # (2C, C) bf16: rows 0:C = (Wq^T Wk)^T, rows C:2C = Wv
    b_cat = b_ref[...]                  # (2C, 1) f32 : rows 0:C = Wk^T bq,     rows C:2C = bv

    def body(k, carry):
        xk = x_ref[k]                                                             # (C, N) bf16
        # One fused projection matmul per slice: [t ; v] = [M^T ; Wv] @ x + [c ; bv]
        proj = jnp.dot(w_cat, xk, preferred_element_type=jnp.float32) + b_cat     # (2C, N) f32
        t_cn = proj[:C, :].astype(jnp.bfloat16)                                   # (C, N)
        v_cn = proj[C:, :].astype(jnp.bfloat16)                                   # (C, N)
        # energy[j, i] = x_j . t_i  (keys on sublanes, queries on lanes); softmax over
        # keys == axis 0.  SAGAN convention: no 1/sqrt(d) scaling.  Row-constant bias
        # terms were dropped (softmax-invariant); the j-dependent term lives in b_cat.
        energy = jax.lax.dot_general(xk, t_cn, (((0,), (0,)), ((), ())),
                                     preferred_element_type=jnp.float32)          # (N, N) f32
        m_col = jnp.max(energy, axis=0, keepdims=True)                            # (1, N) lane-dense
        e = jnp.exp(energy - m_col)                                               # (N, N) f32
        s = jnp.sum(e, axis=0, keepdims=True)                                     # (1, N) row sums
        p = e.astype(jnp.bfloat16)                                                # single cast of the big tile
        o = jnp.dot(v_cn, p, preferred_element_type=jnp.float32)                  # (C, N) attended values
        # deferred softmax normalization on the small (C, N) tile
        o = o * pl.reciprocal(s, approx=True)
        out_ref[k] = gamma * o + xk.astype(jnp.float32)                           # gamma-scaled residual
        return carry

    jax.lax.fori_loop(0, K, body, None, unroll=bool(K <= 2))


def _vmem_capacity_bytes():
    try:
        return int(pltpu.get_tpu_info().vmem_capacity_bytes)
    except Exception:
        return 64 * 1024 * 1024      # assume the smallest (v7x per-TC) when unknown


def _pick_bm_tile(bm, c, n):
    """Largest divisor of bm whose per-step working set fits a generation-aware scratch
    budget and (when bm allows) leaves >= 4 grid steps so both v7x TensorCores keep
    >= 2 pipelined steps each."""
    vmem = _vmem_capacity_bytes()
    budget = min(vmem // 3, 48 * 1024 * 1024)            # headroom for double-buffered blocks + compiler scratch
    fixed = 2 * n * n * 4 + n * n * 2 + 4 * c * n * 4    # energy + exp (f32), p (bf16), proj/t/v/o tiles
    per_slice = c * n * (2 * 2 + 2 * 4)                  # double-buffered bf16 x block + f32 out block
    cap = max(1, (budget - fixed) // max(per_slice, 1))
    cap = min(cap, 16)
    if bm >= 4:
        cap = min(cap, bm // 4)                          # >= 2 steps per TensorCore on v7x
    elif bm >= 2:
        cap = min(cap, bm // 2)
    cap = max(1, min(cap, bm))
    for t in range(cap, 0, -1):
        if bm % t == 0:
            return t
    return 1


def self_attention(x, params):
    """x: (B, C, T, W, H) float32, PyTorch axis convention."""
    wq, bq = params["wq"], params["bq"]      # (C//8, C), (C//8,)
    wk, bk = params["wk"], params["bk"]      # (C//8, C), (C//8,)   (bk cancels under softmax)
    wv, bv = params["wv"], params["bv"]      # (C, C),    (C,)
    gamma = params["gamma"]                  # (1,)

    B, C, T, W, H = x.shape
    N = W * H
    Bm = B * T

    # Flat reinterpretation, matches torch's x.view(-1, C, W, H).view(Bm, C, N):
    # a reshape only, plus a bf16 cast that halves the dominant HBM stream.
    x_cn = x.reshape(Bm, C, N).astype(jnp.bfloat16)

    # Fold the C//8-wide q/k 1x1 convs into one dense (C, C) contraction and concat
    # with the value projection -> one (2C, C) matmul per slice inside the kernel.
    mqk_t = (wk.T @ wq).astype(jnp.float32)                    # (C, C) = (Wq^T Wk)^T
    cvec = (wk.T @ bq).reshape(C, 1).astype(jnp.float32)       # (C, 1) surviving (j-dependent) bias term
    w_cat = jnp.concatenate([mqk_t, wv.astype(jnp.float32)], axis=0).astype(jnp.bfloat16)   # (2C, C)
    b_cat = jnp.concatenate([cvec, bv.reshape(C, 1).astype(jnp.float32)], axis=0)           # (2C, 1)

    bm_tile = _pick_bm_tile(Bm, C, N)
    grid = (Bm // bm_tile,)

    blk_bytes = bm_tile * C * N * (2 + 4)                 # bf16 input + f32 output block, per buffer
    est = 2 * blk_bytes + 3 * (N * N * 4) + (4 << 20)
    vmem_limit = int(min(max(est, 32 * 1024 * 1024), 48 * 1024 * 1024))

    out_cn = pl.pallas_call(
        _self_attn_kernel,
        out_shape=jax.ShapeDtypeStruct((Bm, C, N), jnp.float32),
        grid=grid,
        in_specs=[
            pl.BlockSpec(memory_space=pltpu.MemorySpace.SMEM),      # gamma (1,)
            pl.BlockSpec((bm_tile, C, N), lambda b: (b, 0, 0)),     # x, channel-major, bf16
            pl.BlockSpec((2 * C, C), lambda b: (0, 0)),             # [ (Wq^T Wk)^T ; Wv ]
            pl.BlockSpec((2 * C, 1), lambda b: (0, 0)),             # [ Wk^T bq ; bv ]
        ],
        out_specs=pl.BlockSpec((bm_tile, C, N), lambda b: (b, 0, 0)),
        compiler_params=pltpu.CompilerParams(
            dimension_semantics=("parallel",),
            vmem_limit_bytes=vmem_limit),
    )(gamma.astype(jnp.float32), x_cn, w_cat, b_cat)

    # TODO(synk): the original torch code adds the viewed (B*T, C, W, H) x to a
    # (B, C, T, W, H) tensor, which does not broadcast; we implement the clearly
    # intended residual (add the original input), applied per-slice in the kernel
    # on the bf16-quantized skip value (within the stated tolerance).
    # TODO(synk): for large feature maps (N = W*H >~ 1400 on v7x's 64 MiB VMEM,
    # ~2000+ on v5e/v6e) the full (N, N) energy should be flash-tiled over key
    # blocks with an online softmax instead of being materialized.
    return out_cn.reshape(B, C, T, W, H)


def reference(x, params):
    """Pure-JAX reproduction of the PyTorch forward (intended semantics, full biases)."""
    wq, bq, wk, bk, wv, bv, gamma = (params[k] for k in
                                     ("wq", "bq", "wk", "bk", "wv", "bv", "gamma"))
    B, C, T, W, H = x.shape
    N = W * H
    x2 = x.reshape(-1, C, N).astype(jnp.float32)                          # (Bm, C, N)
    pq = jnp.einsum('oc,bcn->bon', wq, x2) + bq[None, :, None]            # (Bm, C8, N)
    pk = jnp.einsum('oc,bcn->bon', wk, x2) + bk[None, :, None]            # (Bm, C8, N)
    pv = jnp.einsum('oc,bcn->bon', wv, x2) + bv[None, :, None]            # (Bm, C, N)
    energy = jnp.einsum('bcn,bcm->bnm', pq, pk)                           # (Bm, N, N)
    attn = jax.nn.softmax(energy, axis=-1)
    out = jnp.einsum('bcn,bmn->bcm', pv, attn)                            # (Bm, C, N)
    out5 = out.reshape(B, C, T, W, H)
    return gamma[0] * out5 + x


if __name__ == "__main__":
    B, C, T, W, H = 2, 32, 2, 16, 16          # in_dim = 32 -> C//8 = 4 ; N = 256 (lane-dense)
    C8 = C // 8
    key = jax.random.PRNGKey(0)
    ks = jax.random.split(key, 7)
    x = jax.random.normal(ks[0], (B, C, T, W, H), jnp.float32)
    params = dict(
        wq=0.1 * jax.random.normal(ks[1], (C8, C), jnp.float32),
        bq=0.1 * jax.random.normal(ks[2], (C8,), jnp.float32),
        wk=0.1 * jax.random.normal(ks[3], (C8, C), jnp.float32),
        bk=0.1 * jax.random.normal(ks[4], (C8,), jnp.float32),
        wv=0.1 * jax.random.normal(ks[5], (C, C), jnp.float32),
        bv=0.1 * jax.random.normal(ks[6], (C,), jnp.float32),
        # torch init is gamma = zeros(1); nonzero here so the attention path is exercised.
        gamma=jnp.array([0.5], jnp.float32),
    )

    out = jax.block_until_ready(self_attention(x, params))
    ref = jax.block_until_ready(reference(x, params))

    assert out.shape == x.shape, (out.shape, x.shape)
    # bf16 x stream + bf16 MXU operands + approx reciprocal -> looser tolerance than f32-only.
    np.testing.assert_allclose(np.asarray(out), np.asarray(ref), rtol=2e-2, atol=2e-2)
    print("KERNEL_OK")
</pallas_src>

<mosaic_0001>
module attributes {stable_mosaic.version = 11 : i64} {
  func.func @_self_attn_kernel(%arg0: i32, %arg1: memref<1xf32, #tpu.memory_space<smem>>, %arg2: memref<1x32x256xbf16, #tpu.memory_space<vmem>>, %arg3: memref<64x32xbf16, #tpu.memory_space<vmem>>, %arg4: memref<64x1xf32, #tpu.memory_space<vmem>>, %arg5: memref<1x32x256xf32, #tpu.memory_space<vmem>>) attributes {dimension_semantics = [#tpu.dimension_semantics<parallel>], iteration_bounds = array<i64: 4>, scalar_prefetch = 0 : i64, scratch_operands = 0 : i64, tpu.core_type = #tpu.core_type<tc>, window_params = [{transform_indices = @transform_0, window_bounds = array<i64: 1>}, {transform_indices = @transform_1, window_bounds = array<i64: 1, 32, 256>}, {pipeline_mode = #tpu.pipeline_mode<synchronous>, transform_indices = @transform_2, window_bounds = array<i64: 64, 32>}, {pipeline_mode = #tpu.pipeline_mode<synchronous>, transform_indices = @transform_3, window_bounds = array<i64: 64, 1>}, {transform_indices = @transform_4, window_bounds = array<i64: 1, 32, 256>}]} {
    %c0 = arith.constant 0 : index
    %0 = memref.load %arg1[%c0] : memref<1xf32, #tpu.memory_space<smem>>
    %c0_0 = arith.constant 0 : index
    %c0_1 = arith.constant 0 : index
    %1 = vector.load %arg3[%c0_0, %c0_1] : memref<64x32xbf16, #tpu.memory_space<vmem>>, vector<64x32xbf16>
    %c0_2 = arith.constant 0 : index
    %c0_3 = arith.constant 0 : index
    %2 = vector.load %arg4[%c0_2, %c0_3] : memref<64x1xf32, #tpu.memory_space<vmem>>, vector<64x1xf32>
    %c0_i32 = arith.constant 0 : i32
    %3 = arith.index_cast %c0_i32 : i32 to index
    %c0_4 = arith.constant 0 : index
    %c0_5 = arith.constant 0 : index
    %4 = vector.load %arg2[%3, %c0_4, %c0_5] : memref<1x32x256xbf16, #tpu.memory_space<vmem>>, vector<1x32x256xbf16>
    %5 = vector.shape_cast %4 : vector<1x32x256xbf16> to vector<32x256xbf16>
    %cst = arith.constant dense<0.000000e+00> : vector<64x256xf32>
    %6 = tpu.matmul %1, %5, %cst {dimension_numbers = #tpu.dot_dimension_numbers<[1], [0], [0], [1], [0, 0, 1, 1], [], []>} : vector<64x32xbf16>, vector<32x256xbf16>, vector<64x256xf32> -> vector<64x256xf32>
    %7 = vector.broadcast %2 : vector<64x1xf32> to vector<64x256xf32>
    %8 = arith.addf %6, %7 : vector<64x256xf32>
    %9 = vector.extract_strided_slice %8 {offsets = [0, 0], sizes = [32, 256], strides = [1, 1]} : vector<64x256xf32> to vector<32x256xf32>
    %10 = arith.truncf %9 : vector<32x256xf32> to vector<32x256xbf16>
    %11 = vector.extract_strided_slice %8 {offsets = [32, 0], sizes = [32, 256], strides = [1, 1]} : vector<64x256xf32> to vector<32x256xf32>
    %12 = arith.truncf %11 : vector<32x256xf32> to vector<32x256xbf16>
    %cst_6 = arith.constant dense<0.000000e+00> : vector<256x256xf32>
    %13 = tpu.matmul %5, %10, %cst_6 {dimension_numbers = #tpu.dot_dimension_numbers<[0], [0], [1], [1], [0, 1, 1, 1], [], []>} : vector<32x256xbf16>, vector<32x256xbf16>, vector<256x256xf32> -> vector<256x256xf32>
    %cst_7 = arith.constant dense<0xFF800000> : vector<256xf32>
    %14 = vector.multi_reduction <maximumf>, %13, %cst_7 [0] : vector<256x256xf32> to vector<256xf32>
    %15 = vector.shape_cast %14 : vector<256xf32> to vector<1x256xf32>
    %16 = vector.broadcast %15 : vector<1x256xf32> to vector<256x256xf32>
    %17 = arith.subf %13, %16 : vector<256x256xf32>
    %18 = math.exp %17 : vector<256x256xf32>
    %cst_8 = arith.constant dense<0.000000e+00> : vector<256xf32>
    %19 = vector.multi_reduction <add>, %18, %cst_8 [0] : vector<256x256xf32> to vector<256xf32>
    %20 = vector.shape_cast %19 : vector<256xf32> to vector<1x256xf32>
    %21 = arith.truncf %18 : vector<256x256xf32> to vector<256x256xbf16>
    %cst_9 = arith.constant dense<0.000000e+00> : vector<32x256xf32>
    %22 = tpu.matmul %12, %21, %cst_9 {dimension_numbers = #tpu.dot_dimension_numbers<[1], [0], [0], [1], [0, 0, 1, 1], [], []>} : vector<32x256xbf16>, vector<256x256xbf16>, vector<32x256xf32> -> vector<32x256xf32>
    %23 = tpu.reciprocal %20 {approx = true} : vector<1x256xf32> -> vector<1x256xf32>
    %24 = vector.broadcast %23 : vector<1x256xf32> to vector<32x256xf32>
    %25 = arith.mulf %22, %24 : vector<32x256xf32>
    %26 = vector.broadcast %0 : f32 to vector<32x256xf32>
    %27 = arith.mulf %26, %25 : vector<32x256xf32>
    %28 = arith.extf %5 : vector<32x256xbf16> to vector<32x256xf32>
    %29 = arith.addf %27, %28 : vector<32x256xf32>
    %30 = arith.index_cast %c0_i32 : i32 to index
    %c0_10 = arith.constant 0 : index
    %c0_11 = arith.constant 0 : index
    %31 = vector.load %arg5[%30, %c0_10, %c0_11] : memref<1x32x256xf32, #tpu.memory_space<vmem>>, vector<1x32x256xf32>
    %32 = vector.shape_cast %31 : vector<1x32x256xf32> to vector<32x256xf32>
    %33 = vector.shape_cast %29 : vector<32x256xf32> to vector<1x32x256xf32>
    tpu.vector_store %arg5[%30, %c0_10, %c0_11], %33 {strides = array<i32>} : memref<1x32x256xf32, #tpu.memory_space<vmem>>, vector<1x32x256xf32>,
    %c1_i32 = arith.constant 1 : i32
    return
  }
  func.func @transform_0(%arg0: i32) -> i32 {
    %c0_i32 = arith.constant 0 : i32
    %c0_i32_0 = arith.constant 0 : i32
    return %c0_i32 : i32
  }
  func.func @transform_1(%arg0: i32) -> (i32, i32, i32) {
    %c0_i32 = arith.constant 0 : i32
    %c0_i32_0 = arith.constant 0 : i32
    %c0_i32_1 = arith.constant 0 : i32
    return %arg0, %c0_i32, %c0_i32_0 : i32, i32, i32
  }
  func.func @transform_2(%arg0: i32) -> (i32, i32) {
    %c0_i32 = arith.constant 0 : i32
    %c0_i32_0 = arith.constant 0 : i32
    %c0_i32_1 = arith.constant 0 : i32
    return %c0_i32, %c0_i32_0 : i32, i32
  }
  func.func @transform_3(%arg0: i32) -> (i32, i32) {
    %c0_i32 = arith.constant 0 : i32
    %c0_i32_0 = arith.constant 0 : i32
    %c0_i32_1 = arith.constant 0 : i32
    return %c0_i32, %c0_i32_0 : i32, i32
  }
  func.func @transform_4(%arg0: i32) -> (i32, i32, i32) {
    %c0_i32 = arith.constant 0 : i32
    %c0_i32_0 = arith.constant 0 : i32
    %c0_i32_1 = arith.constant 0 : i32
    return %arg0, %c0_i32, %c0_i32_0 : i32, i32, i32
  }
}

</mosaic_0001>

<bundles_post_ra>
// kernel: tpu_custom_call.1
= control target key start
LH: loop header
LB: loop body
LE: loop exit
PB: predicated region body
PF: predicated region fallthrough
CT: control target
= control target key end

     0   :  { %s2567_s0 = inlined_call_operand.<no memory space> [shape: f32[1], index: 0, kind: input, shape index: {}]   ;;  %s2568_s1 = inlined_call_operand.hbm [shape: bf16[4,32,256], index: 1, kind: input, shape index: {}]   ;;  %s2569_s2 = inlined_call_operand.vmem [shape: bf16[64,32], index: 2, kind: input, shape index: {}]   ;;  %s2570_s3 = inlined_call_operand.vmem [shape: f32[64,1], index: 3, kind: input, shape index: {}]   ;;  %s2571_s4 = inlined_call_operand.hbm [shape: f32[4,32,256], index: 4, kind: output, shape index: {}]  }
   0x1   :  { %9 = sst [smem:[#allocation2]] %s2567_s0 }
   0x2   :  { %10 = vsyncpa [#allocation4], 0 }
   0x3   :  { %12 = vsyncpa [#allocation4 + $0x1], 0 }
   0x4   :  { %13 = vsyncpa [#allocation5], 0 }
   0x5   :  { %15 = vsyncpa [#allocation5 + $0x1], 0  ;;  %s1615_s17 = smov 0   ;;  %s1617_s18 = smov 0  }
   0x6   :  { %s1619_s19 = smov 0   ;;  %s1621_s20 = smov 0  }
   0x7 LB: > { %s1636_s0 = sadd.s32 4294967295, %s1578_s20   ;;  %s1241_s21 = sadd.s32 4294967294, %s1578_s20   ;;  %s1578_s20 = sphi %s1621_s20, %s2748_s20   ;;  %s1574_s19 = sphi %s1619_s19, %s2747_s19   ;;  %s1570_s18 = sphi %s1617_s18, %s2746_s18   ;;  %s1566_s17 = sphi %s1615_s17, %s2745_s17  }
   0x8   : > { %s1640_s22 = sadd.s32 1, %s1578_s20   ;;  %s49_s23 = sadd.s32 1, %s1574_s19 }
   0x9   : > { %s46_s24 = ssub.s32 %s1578_s20, %s1640_s22  ;;  %p56_p0 = scmp.ne.s32.totalorder %s1574_s19, %s1570_s18 }
   0xa   : > { %p47_p1 = scmp.eq.s32.totalorder %s46_s24, 0  ;;  %p57_p2 = scmp.eq.s32.totalorder %s1578_s20, 0 }
   0xb   : > { %p62_p3 = scmp.ne.s32.totalorder %s1570_s18, %s1566_s17  ;;  %p63_p4 = scmp.eq.s32.totalorder %s1636_s0, 0 }
   0xc   : > { %s1652_s25 = scalar_select %p47_p1, %s1574_s19, %s49_s23  }
   0xd   : > { %p1654_p5 = por %p57_p2, %p56_p0  ;;  %p1658_p6 = por %p63_p4, %p62_p3 }
   0xe   : > { %p128_p7 = scmp.eq.s32.totalorder %s1636_s0, 3  ;;  %p134_p8 = scmp.eq.s32.totalorder %s1241_s21, 3 }
   0xf   : > { %p1297_p9 = scmp.lt.s32.totalorder %s1578_s20, 4  ;;  %s163_s30 = sand.u32 1, %s1574_s19  }
  0x10   : > { %p1664_p10 = por %p128_p7, %p56_p0  ;;  %p1668_p11 = por %p134_p8, %p62_p3 }
  0x11   : > { %s1283_s5 = sshll.u32 %s1578_s20, 9  ;;  %s1244_s6 = sshll.u32 %s163_s30, 5 }
  0x12   : > { %s2623_s28 = scalar_select %p1664_p10, 1, 0 }
  0x13   : > { %s2624_s29 = scalar_select %p1668_p11, 1, 0 }
  0x14   : > { %s1677_s9 = scalar_lea.hbm %s2568_s1, %s1283_s5  ;;  %s167_s10 = scalar_lea.vmem [#allocation3], %s1244_s6 }
  0x15   : > { %s174_s11 = sshll.u32 %s167_s10, 4  ;;  %p1681_p12 = pnand %p1297_p9, %p1654_p5  ;;  %s1685_s11 = int_to_ptr.vmem [resolvable:$true] %s174_s11 }
  0x16   : > { %s1687_s13 = scalar_lea.sflag [#allocation4], %s163_s30  ;;  %s1482_s14 = scalar_lea.hbm %s1677_s9, 512 }
  0x17   : > { %p1483_p13 = scmp.ne.s32.totalorder %s1677_s9, %s1482_s14  ;;  %p1484_p0 = pneg %p1681_p12 }
  0x18   : > { %s1487_s21 = scalar_lea.hbm %s2568_s1, 2048  ;;  %p1488_p3 = scmp.lt.u32.totalorder %s1677_s9, %s2568_s1 }
  0x19   : > { %p1485_p1 = pnand %p1484_p0, %p1483_p13  ;;  %p1489_p4 = scmp.lt.u32.totalorder %s1487_s21, %s1482_s14 }
  0x1a   : > { %p1491_p7 = scmp.lt.u32.totalorder %s1482_s14, %s1677_s9 }
  0x1b   : > { %p1486_p2 = pneg %p1485_p1  ;;  %p1490_p5 = por %p1489_p4, %p1488_p3 }
  0x1d   : > { %p1492_p8 = por %p1491_p7, %p1490_p5 }
  0x1f   : > { %p1493_p9 = pnand %p1492_p8, %p1486_p2 }
  0x21   : > { %1496 = shalt.err (!%p1493_p9)
}
  0x22   : > { %s1497_s26 = scalar_lea.vmem %s1685_s11, 512  ;;  %s1580_s30 = smov [#allocation3]  }
  0x23   : > { %p1498_p13 = scmp.ne.s32.totalorder %s1685_s11, %s1497_s26  ;;  %s1502_s5 = sshll.u32 %s1580_s30, 4  ;;  %s1503_s5 = int_to_ptr.vmem [resolvable:$false] %s1502_s5 }
  0x24   : > { %s1504_s6 = scalar_lea.vmem %s1503_s5, 1024  ;;  %p1505_p10 = scmp.lt.s32.totalorder %s1685_s11, %s1503_s5 }
  0x25   : > { %p1500_p1 = pnand %p1498_p13, %p1484_p0  ;;  %p1506_p3 = scmp.lt.s32.totalorder %s1504_s6, %s1497_s26 }
  0x27   : > { %p1501_p11 = pneg %p1500_p1  ;;  %p1507_p4 = por %p1506_p3, %p1505_p10 }
  0x29   : > { %p1508_p5 = pnand %p1507_p4, %p1501_p11 }
  0x2b   : > { %1511 = shalt.err (!%p1508_p5)
}
  0x2c   : > { %s1581_s7 = smov 128   ;;  %s1582_s8 = smov 8  }
  0x2d   : > { %1292 = dma.hbm_to_vmem [thread:$0]  (!%p1681_p12), %s1677_s9, 512, %s1685_s11, %s1687_s13, %s1581_s7, %s1581_s7, %s1582_s8  }
  0x2e   : > { %p1247_p0 = scmp.ge.s32.totalorder %s1578_s20, 1  ;;  %p182_p2 = scmp.lt.s32.totalorder %s1578_s20, 5 }
  0x30   : > { %p183_p7 = pnand %p1247_p0, %p182_p2 }
  0x32   : > { %186 = sbr.rel (%p183_p7) target bundleno = 1018 (0x3fa), region = 36 }
  0x39   : > { %s1718_s10 = sand.u32 1, %s1570_s18  }
  0x3a   : > { %s1248_s14 = sshll.u32 %s1718_s10, 5  ;;  %s189_s15 = scalar_lea.sflag [#allocation4], %s1718_s10 }
  0x3b   : > { %s1722_s16 = scalar_lea.vmem [#allocation3], %s1248_s14 }
  0x3c   : > { %1557 = dma.done.wait (%p1658_p6), %s189_s15, 512  }
  0x3d   : > { %1559 = vsyncadd (%p1658_p6), %s189_s15, 4294966784  ;;  %v1583_v0 = vmov 0   ;;  %v235_v1 = vld [vmem:[%s1722_s16] sm:$0xff]  ;;  %v236_v2 = vld [vmem:[%s1722_s16 + $0x8] sm:$0xff]  ;;  %vm319_vm0 = vcmask 261120   ;;  %s218_s26 = sld [smem:[#allocation2]] }
  0x3e   : > { %364 = vmatprep.mubr.bf16.mxu0 %v1583_v0  ;;  %1336 = vset.pattern.permute.xlu0 %v1583_v0  ;;  %v237_v3 = vld [vmem:[%s1722_s16 + $0x10] sm:$0xff]  ;;  %v1255_v4 = vcombine.high %v235_v1, %v236_v2  ;;  %v1254_v5 = vcombine.low %v235_v1, %v236_v2  ;;  %v238_v6 = vld [vmem:[%s1722_s16 + $0x18] sm:$0xff]  ;;  %v227_v8 = vld [vmem:[%s2570_s3] sm:$0xff]  ;;  %s1249_s30 = sshll.u32 %s1718_s10, 6  ;;  %s1284_s6 = sshll.u32 %s1636_s0, 10 }
  0x3f   : > { %1337 = vset.pattern.permute.xlu1 %v1583_v0  ;;  %525 = vmatprep.mubr.bf16.mxu1 %v1583_v0  ;;  %v1257_v7 = vcombine.high %v237_v3, %v238_v6  ;;  %v229_v9 = vld [vmem:[%s2570_s3 + $0x10] sm:$0xff]  ;;  %v1256_v10 = vcombine.low %v237_v3, %v238_v6  ;;  %v228_v11 = vld [vmem:[%s2570_s3 + $0x8] sm:$0xff]  ;;  %v230_v12 = vld [vmem:[%s2570_s3 + $0x18] sm:$0xff]  ;;  %s2505_s5 = scalar_lea.vmem [#allocation6], %s1249_s30  ;;  %s2519_s14 = scalar_lea.hbm %s2571_s4, %s1284_s6 }
  0x40   : > { %332 = vmatprep.subr.bf16.mxu0 %v1255_v4  ;;  %241 = vperm.xlu0 %1336, %v227_v8   ;;  %v1342_v13 = vld [vmem:[%s2569_s2] sm:$0xff]   ;;  %v1343_v14 = vld [vmem:[%s2569_s2 + $0x8] sm:$0xff]   ;;  %v1344_v15 = vld [vmem:[%s2569_s2 + $0x10] sm:$0xff]   ;;  %s1168_s7 = sshll.u32 %s2505_s5, 4  ;;  %s1155_s0 = scalar_lea.sflag [#allocation5], %s1718_s10  ;;  %s2521_s7 = int_to_ptr.vmem [resolvable:$true] %s1168_s7 }
  0x41   : > { %333 = vmatpush1.bf16.msra.mxu0 %v1254_v5  ;;  %251 = vperm.xlu1 %1337, %v229_v9   ;;  %v1345_v16 = vld [vmem:[%s2569_s2 + $0x18] sm:$0xff]   ;;  %v231_v17 = vld [vmem:[%s2570_s3 + $0x20] sm:$0xff]  ;;  %v232_v18 = vld [vmem:[%s2570_s3 + $0x28] sm:$0xff]  ;;  %s1512_s15 = scalar_lea.vmem %s2521_s7, 1024  ;;  %p2743_p10 = scmp.ne.s32.totalorder %s2623_s28, 0 }
  0x42   : > { %334 = vmatprep.subr.bf16.mxu0 %v1257_v7  ;;  %v233_v19 = vld [vmem:[%s2570_s3 + $0x30] sm:$0xff]  ;;  %v234_v20 = vld [vmem:[%s2570_s3 + $0x38] sm:$0xff]  ;;  %p1513_p6 = scmp.ne.s32.totalorder %s2521_s7, %s1512_s15  ;;  %s1584_s27 = smov [#allocation6]  }
  0x43   : > { %s1516_s9 = sshll.u32 %s1584_s27, 4  ;;  %s1517_s9 = int_to_ptr.vmem [resolvable:$false] %s1516_s9 }
  0x44   : > { %246 = vperm.xlu0 %1336, %v228_v11   ;;  %p1514_p11 = pnand %p1513_p6, %p2743_p10  ;;  %s1518_s11 = scalar_lea.vmem %s1517_s9, 2048 }
  0x45   : > { %335 = vmatpush1.bf16.msra.mxu0 %v1256_v10  ;;  %256 = vperm.xlu1 %1337, %v230_v12   ;;  %p1519_p8 = scmp.lt.s32.totalorder %s2521_s7, %s1517_s9  ;;  %p1520_p9 = scmp.lt.s32.totalorder %s1518_s11, %s1512_s15 }
  0x46   : > { %p1515_p12 = pneg %p1514_p11 }
  0x47   : > { %p1521_p13 = por %p1520_p9, %p1519_p8 }
  0x48   : > { %1258 = vmatmul.mubr.msk.bf16.vlgmr.msra.gmra.mrb[0].mxu0 %vm319_vm0, %v1342_v13 }
  0x49   : > { %374 = vmatprep.mubr.bf16.mxu0 %v1583_v0  ;;  %p1522_p1 = pnand %p1521_p13, %p1515_p12 }
  0x50   : > { %1259 = vmatmul.mubr.msk.bf16.gmra.mrb[4].mxu0 %vm319_vm0, %v1343_v14 }
  0x51   : > { %384 = vmatprep.mubr.bf16.mxu0 %v1583_v0 }
  0x58   : > { %1260 = vmatmul.mubr.msk.bf16.gmra.mrb[8].mxu0 %vm319_vm0, %v1344_v15 }
  0x59   : > { %394 = vmatprep.mubr.bf16.mxu0 %v1583_v0 }
  0x60   : > { %1261 = vmatmul.mubr.msk.bf16.gmra.mrb[12].mxu0 %vm319_vm0, %v1345_v16 }
  0x62   : > { %413 = vxpose.xlu0.c.b16.start [1/2] (short) %v1254_v5, 128 }
  0x66   : > { %414 = vxpose.xlu0.c.b16.end [2/2] (short) %v1256_v10, 128 }
  0x68   : > { %429 = vxpose.xlu1.c.b16.start [1/2] (short) %v1255_v4, 128 }
  0x6c   : > { %430 = vxpose.xlu1.c.b16.end [2/2] (short) %v1257_v7, 128 }
  0x87   : > { %261 = vperm.xlu0 %1336, %v231_v17  }
  0x88   : > { %266 = vperm.xlu1 %1337, %v232_v18  }
  0x8b   : > { %271 = vperm.xlu0 %1336, %v233_v19  }
  0x8c   : > { %276 = vperm.xlu1 %1337, %v234_v20  }
  0xbf   : > { %v242_v21 = vpop.permute.xlu0 %241 }
  0xc0   : > { %v252_v22 = vpop.permute.xlu1 %251 }
  0xc3   : > { %v247_v23 = vpop.permute.xlu0 %246 }
  0xc4   : > { %v257_v24 = vpop.permute.xlu1 %256 }
  0xc8   : > { %v421_v25 = vpop.trf.xlu0 }
  0xcc   : > { %v1781_v27 = vpop.trf.xlu0 }
  0xce   : > { %v1779_v26 = vpop.trf.xlu1 }
  0xd0   : > { %v1785_v29 = vpop.trf.xlu0 }
  0xd2   : > { %v1783_v28 = vpop.trf.xlu1 }
  0xd4   : > { %v1789_v31 = vpop.trf.xlu0 }
  0xd6   : > { %v1787_v30 = vpop.trf.xlu1 }
  0xd8   : > { %v1793_v33 = vpop.trf.xlu0 }
  0xda   : > { %v1791_v32 = vpop.trf.xlu1 }
  0xdc   : > { %v1797_v35 = vpop.trf.xlu0 }
  0xde   : > { %v1795_v34 = vpop.trf.xlu1 }
  0xe0   : > { %v427_v43 = vpop.trf.xlu0 }
  0xe2   : > { %v1799_v36 = vpop.trf.xlu1 }
  0xe4   : > { %v428_v51 = vpop.trf.xlu0 }
  0xe6   : > { %v1801_v47 = vpop.trf.xlu1 }
  0xea   : > { %v444_v56 = vpop.trf.xlu1 }
 0x106   : > { %v262_v61 = vpop.permute.xlu0 %261 }
 0x107   : > { %v267_v2 = vpop.permute.xlu1 %266 }
 0x10a   : > { %v272_v11 = vpop.permute.xlu0 %271 }
 0x10b   : > { %v277_v13 = vpop.permute.xlu1 %276 }
 0x11b   : > { %v366_v37 = vpop.f32.mrb[0].mxu0 }
 0x11c   : > { %v368_v38 = vpop.f32.mrb[1].mxu0  ;;  %v367_v40 = vadd.f32 %v366_v37, %v242_v21 }
 0x11d   : > { %v370_v39 = vpop.f32.mrb[2].mxu0  ;;  %v369_v44 = vadd.f32 %v368_v38, %v242_v21 }
 0x11e   : > { %v371_v41 = vadd.f32 %v370_v39, %v247_v23  ;;  %v372_v42 = vpop.f32.mrb[3].mxu0 }
 0x11f   : > { %v373_v45 = vadd.f32 %v372_v42, %v247_v23 }
 0x120   : > { %v405_v46 = vpack.c.bf16 %v371_v41, %v367_v40 }
 0x121   : > { %v406_v48 = vpack.c.bf16 %v373_v45, %v369_v44 }
 0x123   : > { %v376_v49 = vpop.f32.mrb[4].mxu0  ;;  %493 = vmatprep.subr.bf16.mxu1 %v406_v48 }
 0x124   : > { %v378_v50 = vpop.f32.mrb[5].mxu0  ;;  %494 = vmatpush1.bf16.msra.mxu1 %v405_v46  ;;  %v377_v53 = vadd.f32 %v376_v49, %v252_v22 }
 0x125   : > { %v380_v52 = vpop.f32.mrb[6].mxu0  ;;  %v379_v57 = vadd.f32 %v378_v50, %v252_v22 }
 0x126   : > { %v381_v54 = vadd.f32 %v380_v52, %v257_v24  ;;  %v382_v55 = vpop.f32.mrb[7].mxu0 }
 0x127   : > { %v383_v58 = vadd.f32 %v382_v55, %v257_v24 }
 0x128   : > { %v407_v59 = vpack.c.bf16 %v381_v54, %v377_v53 }
 0x129   : > { %v408_v60 = vpack.c.bf16 %v383_v58, %v379_v57 }
 0x12b   : > { %v386_v62 = vpop.f32.mrb[8].mxu0  ;;  %495 = vmatprep.subr.bf16.mxu1 %v408_v60 }
 0x12c   : > { %v1803_v63 = vadd.f32 %v386_v62, %v262_v61  ;;  %v388_v1 = vpop.f32.mrb[9].mxu0  ;;  %496 = vmatpush1.bf16.msra.mxu1 %v407_v59 }
 0x12d   : > { %v390_v3 = vpop.f32.mrb[10].mxu0  ;;  %v389_v6 = vadd.f32 %v388_v1, %v262_v61 }
 0x12e   : > { %2626 = vst [vmem:[#allocation9_spill] sm:$0xff] %v1803_v63  ;;  %v1805_v4 = vadd.f32 %v390_v3, %v267_v2  ;;  %v392_v5 = vpop.f32.mrb[11].mxu0 }
 0x12f   : > { %v393_v7 = vadd.f32 %v392_v5, %v267_v2  ;;  %1262 = vmatmul.mubr.msk.bf16.vlgmr.msra.gmra.mrb[0].mxu1 %vm319_vm0, %v421_v25 }
 0x130   : > { %2627 = vst [vmem:[#allocation10_spill] sm:$0xff] %v1805_v4  ;;  %535 = vmatprep.mubr.bf16.mxu1 %v1583_v0 }
 0x131   : > { %v410_v9 = vpack.c.bf16 %v393_v7, %v389_v6 }
 0x133   : > { %v396_v10 = vpop.f32.mrb[12].mxu0  ;;  %1090 = vmatprep.mubr.bf16.mxu0 %v410_v9 }
 0x134   : > { %v398_v12 = vpop.f32.mrb[13].mxu0  ;;  %v1811_v15 = vadd.f32 %v396_v10, %v272_v11 }
 0x135   : > { %v400_v14 = vpop.f32.mrb[14].mxu0  ;;  %v1815_v18 = vadd.f32 %v398_v12, %v272_v11 }
 0x136   : > { %2628 = vst [vmem:[#allocation11_spill] sm:$0xff] %v1811_v15  ;;  %v1813_v16 = vadd.f32 %v400_v14, %v277_v13  ;;  %v402_v17 = vpop.f32.mrb[15].mxu0 }
 0x137   : > { %2630 = vst [vmem:[#allocation13_spill] sm:$0xff] %v1815_v18  ;;  %v1817_v19 = vadd.f32 %v402_v17, %v277_v13  ;;  %1263 = vmatmul.mubr.msk.bf16.gmra.mrb[4].mxu1 %vm319_vm0, %v1781_v27 }
 0x138   : > { %2629 = vst [vmem:[#allocation12_spill] sm:$0xff] %v1813_v16  ;;  %545 = vmatprep.mubr.bf16.mxu1 %v1583_v0 }
 0x139   : > { %2631 = vst [vmem:[#allocation14_spill] sm:$0xff] %v1817_v19 }
 0x13f   : > { %1264 = vmatmul.mubr.msk.bf16.gmra.mrb[8].mxu1 %vm319_vm0, %v1785_v29 }
 0x140   : > { %555 = vmatprep.mubr.bf16.mxu1 %v1583_v0 }
 0x147   : > { %1265 = vmatmul.mubr.msk.bf16.gmra.mrb[12].mxu1 %vm319_vm0, %v1789_v31 }
 0x148   : > { %565 = vmatprep.mubr.bf16.mxu1 %v1583_v0 }
 0x14f   : > { %1266 = vmatmul.mubr.msk.bf16.gmra.mrb[16].mxu1 %vm319_vm0, %v1793_v33 }
 0x150   : > { %575 = vmatprep.mubr.bf16.mxu1 %v1583_v0 }
 0x157   : > { %1267 = vmatmul.mubr.msk.bf16.gmra.mrb[20].mxu1 %vm319_vm0, %v1797_v35 }
 0x158   : > { %585 = vmatprep.mubr.bf16.mxu1 %v1583_v0 }
 0x15f   : > { %1268 = vmatmul.mubr.msk.bf16.gmra.mrb[24].mxu1 %vm319_vm0, %v427_v43 }
 0x160   : > { %595 = vmatprep.mubr.bf16.mxu1 %v1583_v0 }
 0x167   : > { %1269 = vmatmul.mubr.msk.bf16.gmra.mrb[28].mxu1 %vm319_vm0, %v428_v51 }
 0x168   : > { %605 = vmatprep.mubr.bf16.mxu1 %v1583_v0 }
 0x16f   : > { %1270 = vmatmul.mubr.msk.bf16.gmra.mrb[32].mxu1 %vm319_vm0, %v1779_v26 }
 0x170   : > { %615 = vmatprep.mubr.bf16.mxu1 %v1583_v0 }
 0x177   : > { %1271 = vmatmul.mubr.msk.bf16.gmra.mrb[36].mxu1 %vm319_vm0, %v1783_v28 }
 0x178   : > { %625 = vmatprep.mubr.bf16.mxu1 %v1583_v0 }
 0x17f   : > { %1272 = vmatmul.mubr.msk.bf16.gmra.mrb[40].mxu1 %vm319_vm0, %v1787_v30 }
 0x180   : > { %635 = vmatprep.mubr.bf16.mxu1 %v1583_v0 }
 0x187   : > { %1273 = vmatmul.mubr.msk.bf16.gmra.mrb[44].mxu1 %vm319_vm0, %v1791_v32 }
 0x188   : > { %645 = vmatprep.mubr.bf16.mxu1 %v1583_v0 }
 0x18f   : > { %1274 = vmatmul.mubr.msk.bf16.gmra.mrb[48].mxu1 %vm319_vm0, %v1795_v34 }
 0x190   : > { %655 = vmatprep.mubr.bf16.mxu1 %v1583_v0 }
 0x197   : > { %1275 = vmatmul.mubr.msk.bf16.gmra.mrb[52].mxu1 %vm319_vm0, %v1799_v36 }
 0x198   : > { %665 = vmatprep.mubr.bf16.mxu1 %v1583_v0 }
 0x19f   : > { %1276 = vmatmul.mubr.msk.bf16.gmra.mrb[56].mxu1 %vm319_vm0, %v1801_v47 }
 0x1a0   : > { %675 = vmatprep.mubr.bf16.mxu1 %v1583_v0 }
 0x1a7   : > { %1277 = vmatmul.mubr.msk.bf16.gmra.mrb[60].mxu1 %vm319_vm0, %v444_v56 }
 0x202   : > { %v1864_v22 = vpop.f32.mrb[0].mxu1 }
 0x203   : > { %v1866_v23 = vpop.f32.mrb[1].mxu1 }
 0x204   : > { %v1868_v24 = vpop.f32.mrb[2].mxu1 }
 0x205   : > { %v1870_v25 = vpop.f32.mrb[3].mxu1 }
 0x20a   : > { %v1872_v26 = vpop.f32.mrb[4].mxu1 }
 0x20b   : > { %v686_v27 = vmax.f32 %v1864_v22, %v1872_v26  ;;  %v1876_v28 = vpop.f32.mrb[5].mxu1 }
 0x20c   : > { %v723_v0 = vmax.f32 %v1866_v23, %v1876_v28  ;;  %v1880_v29 = vpop.f32.mrb[6].mxu1 }
 0x20d   : > { %v687_v30 = vmax.f32 %v1868_v24, %v1880_v29  ;;  %v1884_v31 = vpop.f32.mrb[7].mxu1 }
 0x20e   : > { %v724_v32 = vmax.f32 %v1870_v25, %v1884_v31 }
 0x212   : > { %v1888_v33 = vpop.f32.mrb[8].mxu1 }
 0x213   : > { %v688_v34 = vmax.f32 %v686_v27, %v1888_v33  ;;  %v1891_v35 = vpop.f32.mrb[9].mxu1 }
 0x214   : > { %v725_v36 = vmax.f32 %v723_v0, %v1891_v35  ;;  %v1894_v37 = vpop.f32.mrb[10].mxu1 }
 0x215   : > { %v689_v38 = vmax.f32 %v687_v30, %v1894_v37  ;;  %v1897_v39 = vpop.f32.mrb[11].mxu1 }
 0x216   : > { %v726_v40 = vmax.f32 %v724_v32, %v1897_v39 }
 0x21a   : > { %v1900_v41 = vpop.f32.mrb[12].mxu1 }
 0x21b   : > { %v690_v42 = vmax.f32 %v688_v34, %v1900_v41  ;;  %v1903_v43 = vpop.f32.mrb[13].mxu1 }
 0x21c   : > { %v727_v44 = vmax.f32 %v725_v36, %v1903_v43  ;;  %v1906_v45 = vpop.f32.mrb[14].mxu1 }
 0x21d   : > { %v691_v46 = vmax.f32 %v689_v38, %v1906_v45  ;;  %v1909_v47 = vpop.f32.mrb[15].mxu1 }
 0x21e   : > { %v728_v48 = vmax.f32 %v726_v40, %v1909_v47 }
 0x222   : > { %v1912_v49 = vpop.f32.mrb[16].mxu1 }
 0x223   : > { %v692_v50 = vmax.f32 %v690_v42, %v1912_v49  ;;  %v1915_v51 = vpop.f32.mrb[17].mxu1 }
 0x224   : > { %v729_v52 = vmax.f32 %v727_v44, %v1915_v51  ;;  %v1918_v53 = vpop.f32.mrb[18].mxu1 }
 0x225   : > { %v693_v54 = vmax.f32 %v691_v46, %v1918_v53  ;;  %v1921_v55 = vpop.f32.mrb[19].mxu1 }
 0x226   : > { %v730_v56 = vmax.f32 %v728_v48, %v1921_v55 }
 0x22a   : > { %v1924_v57 = vpop.f32.mrb[20].mxu1 }
 0x22b   : > { %v694_v58 = vmax.f32 %v692_v50, %v1924_v57  ;;  %v1927_v59 = vpop.f32.mrb[21].mxu1 }
 0x22c   : > { %v731_v60 = vmax.f32 %v729_v52, %v1927_v59  ;;  %v1930_v61 = vpop.f32.mrb[22].mxu1 }
 0x22d   : > { %v695_v62 = vmax.f32 %v693_v54, %v1930_v61  ;;  %v1933_v1 = vpop.f32.mrb[23].mxu1 }
 0x22e   : > { %2632 = vst [vmem:[#allocation15_spill] sm:$0xff] %v1933_v1  ;;  %v732_v2 = vmax.f32 %v730_v56, %v1933_v1 }
 0x232   : > { %v1936_v3 = vpop.f32.mrb[24].mxu1 }
 0x233   : > { %v696_v5 = vmax.f32 %v694_v58, %v1936_v3  ;;  %v1939_v6 = vpop.f32.mrb[25].mxu1 }
 0x234   : > { %2633 = vst [vmem:[#allocation16_spill] sm:$0xff] %v1939_v6  ;;  %v733_v7 = vmax.f32 %v731_v60, %v1939_v6  ;;  %v1942_v9 = vpop.f32.mrb[26].mxu1 }
 0x235   : > { %v697_v10 = vmax.f32 %v695_v62, %v1942_v9  ;;  %v1945_v11 = vpop.f32.mrb[27].mxu1 }
 0x236   : > { %2634 = vst [vmem:[#allocation17_spill] sm:$0xff] %v1945_v11  ;;  %v734_v12 = vmax.f32 %v732_v2, %v1945_v11 }
 0x23a   : > { %v1948_v13 = vpop.f32.mrb[28].mxu1 }
 0x23b   : > { %v698_v14 = vmax.f32 %v696_v5, %v1948_v13  ;;  %v1951_v17 = vpop.f32.mrb[29].mxu1 }
 0x23c   : > { %2635 = vst [vmem:[#allocation18_spill] sm:$0xff] %v1951_v17  ;;  %v735_v27 = vmax.f32 %v733_v7, %v1951_v17  ;;  %v1954_v0 = vpop.f32.mrb[30].mxu1 }
 0x23d   : > { %v699_v30 = vmax.f32 %v697_v10, %v1954_v0  ;;  %v1957_v32 = vpop.f32.mrb[31].mxu1 }
 0x23e   : > { %2636 = vst [vmem:[#allocation19_spill] sm:$0xff] %v1957_v32  ;;  %v736_v34 = vmax.f32 %v734_v12, %v1957_v32 }
 0x242   : > { %v1960_v36 = vpop.f32.mrb[32].mxu1 }
 0x243   : > { %v700_v38 = vmax.f32 %v698_v14, %v1960_v36  ;;  %v1963_v40 = vpop.f32.mrb[33].mxu1 }
 0x244   : > { %2637 = vst [vmem:[#allocation20_spill] sm:$0xff] %v1963_v40  ;;  %v737_v42 = vmax.f32 %v735_v27, %v1963_v40  ;;  %v1966_v44 = vpop.f32.mrb[34].mxu1 }
 0x245   : > { %v701_v46 = vmax.f32 %v699_v30, %v1966_v44  ;;  %v1969_v48 = vpop.f32.mrb[35].mxu1 }
 0x246   : > { %2638 = vst [vmem:[#allocation21_spill] sm:$0xff] %v1969_v48  ;;  %v738_v50 = vmax.f32 %v736_v34, %v1969_v48 }
 0x24a   : > { %v1972_v52 = vpop.f32.mrb[36].mxu1 }
 0x24b   : > { %v702_v54 = vmax.f32 %v700_v38, %v1972_v52  ;;  %v1975_v56 = vpop.f32.mrb[37].mxu1 }
 0x24c   : > { %2639 = vst [vmem:[#allocation22_spill] sm:$0xff] %v1975_v56  ;;  %v739_v58 = vmax.f32 %v737_v42, %v1975_v56  ;;  %v1978_v60 = vpop.f32.mrb[38].mxu1 }
 0x24d   : > { %v703_v62 = vmax.f32 %v701_v46, %v1978_v60  ;;  %v1981_v2 = vpop.f32.mrb[39].mxu1 }
 0x24e   : > { %2640 = vst [vmem:[#allocation23_spill] sm:$0xff] %v1981_v2  ;;  %v740_v5 = vmax.f32 %v738_v50, %v1981_v2 }
 0x252   : > { %v1984_v7 = vpop.f32.mrb[40].mxu1 }
 0x253   : > { %v704_v10 = vmax.f32 %v702_v54, %v1984_v7  ;;  %v1987_v12 = vpop.f32.mrb[41].mxu1 }
 0x254   : > { %2641 = vst [vmem:[#allocation24_spill] sm:$0xff] %v1987_v12  ;;  %v741_v14 = vmax.f32 %v739_v58, %v1987_v12  ;;  %v1990_v27 = vpop.f32.mrb[42].mxu1 }
 0x255   : > { %v705_v30 = vmax.f32 %v703_v62, %v1990_v27  ;;  %v1993_v34 = vpop.f32.mrb[43].mxu1 }
 0x256   : > { %2642 = vst [vmem:[#allocation25_spill] sm:$0xff] %v1993_v34  ;;  %v742_v38 = vmax.f32 %v740_v5, %v1993_v34 }
 0x25a   : > { %v1996_v42 = vpop.f32.mrb[44].mxu1 }
 0x25b   : > { %v706_v46 = vmax.f32 %v704_v10, %v1996_v42  ;;  %v1999_v50 = vpop.f32.mrb[45].mxu1 }
 0x25c   : > { %2643 = vst [vmem:[#allocation26_spill] sm:$0xff] %v1999_v50  ;;  %v743_v54 = vmax.f32 %v741_v14, %v1999_v50  ;;  %v2002_v20 = vpop.f32.mrb[46].mxu1 }
 0x25d   : > { %v707_v58 = vmax.f32 %v705_v30, %v2002_v20  ;;  %v2005_v21 = vpop.f32.mrb[47].mxu1 }
 0x25e   : > { %2644 = vst [vmem:[#allocation27_spill] sm:$0xff] %v2005_v21  ;;  %v744_v62 = vmax.f32 %v742_v38, %v2005_v21 }
 0x262   : > { %v2008_v8 = vpop.f32.mrb[48].mxu1 }
 0x263   : > { %v708_v5 = vmax.f32 %v706_v46, %v2008_v8  ;;  %v2011_v15 = vpop.f32.mrb[49].mxu1 }
 0x264   : > { %2645 = vst [vmem:[#allocation28_spill] sm:$0xff] %v2011_v15  ;;  %v745_v10 = vmax.f32 %v743_v54, %v2011_v15  ;;  %v2014_v16 = vpop.f32.mrb[50].mxu1 }
 0x265   : > { %v709_v14 = vmax.f32 %v707_v58, %v2014_v16  ;;  %v2017_v18 = vpop.f32.mrb[51].mxu1 }
 0x266   : > { %2646 = vst [vmem:[#allocation29_spill] sm:$0xff] %v2017_v18  ;;  %v746_v30 = vmax.f32 %v744_v62, %v2017_v18 }
 0x26a   : > { %v2020_v19 = vpop.f32.mrb[52].mxu1 }
 0x26b   : > { %v710_v38 = vmax.f32 %v708_v5, %v2020_v19  ;;  %v2023_v63 = vpop.f32.mrb[53].mxu1 }
 0x26c   : > { %2647 = vst [vmem:[#allocation30_spill] sm:$0xff] %v2023_v63  ;;  %v747_v46 = vmax.f32 %v745_v10, %v2023_v63  ;;  %v2026_v4 = vpop.f32.mrb[54].mxu1 }
 0x26d   : > { %v711_v54 = vmax.f32 %v709_v14, %v2026_v4  ;;  %v2029_v15 = vpop.f32.mrb[55].mxu1 }
 0x26e   : > { %2648 = vst [vmem:[#allocation31_spill] sm:$0xff] %v2029_v15  ;;  %v748_v58 = vmax.f32 %v746_v30, %v2029_v15 }
 0x272   : > { %v2032_v21 = vpop.f32.mrb[56].mxu1 }
 0x273   : > { %v712_v62 = vmax.f32 %v710_v38, %v2032_v21  ;;  %v2035_v18 = vpop.f32.mrb[57].mxu1 }
 0x274   : > { %2649 = vst [vmem:[#allocation32_spill] sm:$0xff] %v2035_v18  ;;  %v749_v5 = vmax.f32 %v747_v46, %v2035_v18  ;;  %v2038_v50 = vpop.f32.mrb[58].mxu1 }
 0x275   : > { %v713_v10 = vmax.f32 %v711_v54, %v2038_v50  ;;  %v2041_v63 = vpop.f32.mrb[59].mxu1 }
 0x276   : > { %2650 = vst [vmem:[#allocation33_spill] sm:$0xff] %v2041_v63  ;;  %v750_v14 = vmax.f32 %v748_v58, %v2041_v63 }
 0x27a   : > { %v2044_v34 = vpop.f32.mrb[60].mxu1 }
 0x27b   : > { %v714_v30 = vmax.f32 %v712_v62, %v2044_v34  ;;  %v2047_v15 = vpop.f32.mrb[61].mxu1 }
 0x27c   : > { %2651 = vst [vmem:[#allocation34_spill] sm:$0xff] %v2047_v15  ;;  %v751_v38 = vmax.f32 %v749_v5, %v2047_v15  ;;  %v2050_v12 = vpop.f32.mrb[62].mxu1 }
 0x27d   : > { %v715_v46 = vmax.f32 %v713_v10, %v2050_v12  ;;  %v2053_v18 = vpop.f32.mrb[63].mxu1 }
 0x27e   : > { %2652 = vst [vmem:[#allocation35_spill] sm:$0xff] %v2053_v18  ;;  %v752_v54 = vmax.f32 %v750_v14, %v2053_v18 }
 0x27f   : > { %v716_v2 = vmax.f32 %v714_v30, %v715_v46 }
 0x280   : > { %v753_v56 = vmax.f32 %v751_v38, %v752_v54 }
 0x281   : > { %v717_v48 = vrot.slane %v716_v2, 4 }
 0x282   : > { %v754_v58 = vrot.slane %v753_v56, 4 }
 0x283   : > { %v718_v63 = vmax.f32 %v716_v2, %v717_v48 }
 0x284   : > { %v755_v40 = vmax.f32 %v753_v56, %v754_v58 }
 0x285   : > { %v719_v32 = vrot.slane %v718_v63, 2 }
 0x286   : > { %v756_v62 = vrot.slane %v755_v40, 2 }
 0x287   : > { %v720_v17 = vmax.f32 %v718_v63, %v719_v32  ;;  %v2672_v32 = vld [vmem:[#allocation34_spill] sm:$0xff] }
 0x288   : > { %v757_v11 = vmax.f32 %v755_v40, %v756_v62 }
 0x289   : > { %v721_v6 = vrot.slane %v720_v17, 1 }
 0x28a   : > { %v758_v5 = vrot.slane %v757_v11, 1 }
 0x28b   : > { %v2056_v15 = vmax.f32 %v720_v17, %v721_v6 }
 0x28c   : > { %v2058_v1 = vmax.f32 %v757_v11, %v758_v5 }
 0x28d   : > { %v760_v10 = vsub.f32 %v1864_v22, %v2056_v15  ;;  %v762_v14 = vsub.f32 %v1868_v24, %v2056_v15  ;;  %v764_v48 = vsub.f32 %v1872_v26, %v2056_v15  ;;  %v766_v56 = vsub.f32 %v1880_v29, %v2056_v15 }
 0x28e   : > { %v768_v63 = vsub.f32 %v1888_v33, %v2056_v15  ;;  %v770_v6 = vsub.f32 %v1894_v37, %v2056_v15  ;;  %v772_v11 = vsub.f32 %v1900_v41, %v2056_v15  ;;  %v774_v22 = vsub.f32 %v1906_v45, %v2056_v15 }
 0x28f   : > { %v776_v24 = vsub.f32 %v1912_v49, %v2056_v15  ;;  %v778_v26 = vsub.f32 %v1918_v53, %v2056_v15  ;;  %v780_v29 = vsub.f32 %v1924_v57, %v2056_v15  ;;  %v782_v33 = vsub.f32 %v1930_v61, %v2056_v15 }
 0x290   : > { %v784_v37 = vsub.f32 %v1936_v3, %v2056_v15  ;;  %v786_v41 = vsub.f32 %v1942_v9, %v2056_v15  ;;  %v788_v45 = vsub.f32 %v1948_v13, %v2056_v15  ;;  %v790_v49 = vsub.f32 %v1954_v0, %v2056_v15 }
 0x291   : > { %v792_v53 = vsub.f32 %v1960_v36, %v2056_v15  ;;  %v794_v57 = vsub.f32 %v1966_v44, %v2056_v15  ;;  %v796_v61 = vsub.f32 %v1972_v52, %v2056_v15  ;;  %v798_v3 = vsub.f32 %v1978_v60, %v2056_v15 }
 0x292   : > { %v800_v9 = vsub.f32 %v1984_v7, %v2056_v15  ;;  %v802_v13 = vsub.f32 %v1990_v27, %v2056_v15  ;;  %v804_v17 = vsub.f32 %v1996_v42, %v2056_v15  ;;  %v806_v0 = vsub.f32 %v2002_v20, %v2056_v15 }
 0x293   : > { %v824_v7 = vmul.f32 1.442695, %v760_v10  ;;  %v828_v27 = vmul.f32 1.442695, %v762_v14  ;;  %v832_v42 = vmul.f32 1.442695, %v764_v48 }
 0x294   : > { %v836_v38 = vmul.f32 1.442695, %v766_v56  ;;  %v840_v54 = vmul.f32 1.442695, %v768_v63  ;;  %v844_v58 = vmul.f32 1.442695, %v770_v6 }
 0x295   : > { %1346 = vpow2.f32 %v824_v7  ;;  %v848_v62 = vmul.f32 1.442695, %v772_v11  ;;  %v852_v5 = vmul.f32 1.442695, %v774_v22  ;;  %v856_v20 = vmul.f32 1.442695, %v776_v24 }
 0x296   : > { %1348 = vpow2.f32 %v828_v27  ;;  %v860_v2 = vmul.f32 1.442695, %v778_v26  ;;  %v864_v10 = vmul.f32 1.442695, %v780_v29  ;;  %v868_v14 = vmul.f32 1.442695, %v782_v33 }
 0x297   : > { %1350 = vpow2.f32 %v832_v42  ;;  %v872_v48 = vmul.f32 1.442695, %v784_v37  ;;  %v876_v30 = vmul.f32 1.442695, %v786_v41  ;;  %v880_v56 = vmul.f32 1.442695, %v788_v45 }
 0x298   : > { %1352 = vpow2.f32 %v836_v38  ;;  %v884_v60 = vmul.f32 1.442695, %v790_v49  ;;  %v888_v46 = vmul.f32 1.442695, %v792_v53  ;;  %v892_v7 = vmul.f32 1.442695, %v794_v57 }
 0x299   : > { %1354 = vpow2.f32 %v840_v54  ;;  %v896_v63 = vmul.f32 1.442695, %v796_v61  ;;  %v900_v6 = vmul.f32 1.442695, %v798_v3  ;;  %v904_v27 = vmul.f32 1.442695, %v800_v9 }
 0x29a   : > { %1356 = vpow2.f32 %v844_v58  ;;  %v2128_v11 = vmul.f32 1.442695, %v802_v13  ;;  %v2130_v22 = vmul.f32 1.442695, %v804_v17  ;;  %v2132_v24 = vmul.f32 1.442695, %v806_v0 }
 0x29b   : > { %1358 = vpow2.f32 %v848_v62  ;;  %v2653_v9 = vld [vmem:[#allocation15_spill] sm:$0xff]  ;;  %v2655_v42 = vld [vmem:[#allocation17_spill] sm:$0xff]  ;;  %v2656_v58 = vld [vmem:[#allocation18_spill] sm:$0xff] }
 0x29c   : > { %1360 = vpow2.f32 %v852_v5  ;;  %v2657_v5 = vld [vmem:[#allocation19_spill] sm:$0xff]  ;;  %v2659_v3 = vld [vmem:[#allocation21_spill] sm:$0xff]  ;;  %v2660_v61 = vld [vmem:[#allocation22_spill] sm:$0xff] }
 0x29d   : > { %1362 = vpow2.f32 %v856_v20  ;;  %v2654_v20 = vld [vmem:[#allocation16_spill] sm:$0xff]  ;;  %v2661_v62 = vld [vmem:[#allocation23_spill] sm:$0xff]  ;;  %v2663_v45 = vld [vmem:[#allocation25_spill] sm:$0xff] }
 0x29e   : > { %1364 = vpow2.f32 %v860_v2  ;;  %v2662_v49 = vld [vmem:[#allocation24_spill] sm:$0xff]  ;;  %v2664_v38 = vld [vmem:[#allocation26_spill] sm:$0xff]  ;;  %v2665_v33 = vld [vmem:[#allocation27_spill] sm:$0xff] }
 0x29f   : > { %v2142_v41 = vpop.eup %1346  ;;  %1366 = vpow2.f32 %v864_v10  ;;  %v2666_v10 = vld [vmem:[#allocation28_spill] sm:$0xff]  ;;  %v2667_v26 = vld [vmem:[#allocation29_spill] sm:$0xff] }
 0x2a0   : > { %v2150_v57 = vpop.eup %1348  ;;  %1368 = vpow2.f32 %v868_v14  ;;  %v2658_v14 = vld [vmem:[#allocation20_spill] sm:$0xff] }
 0x2a1   : > { %v2158_v17 = vpop.eup %1350  ;;  %1370 = vpow2.f32 %v872_v48  ;;  %v952_v0 = vadd.f32 %v2150_v57, %v2142_v41  ;;  %v2671_v48 = vld [vmem:[#allocation33_spill] sm:$0xff] }
 0x2a2   : > { %v2166_v54 = vpop.eup %1352  ;;  %1372 = vpow2.f32 %v876_v30  ;;  %v2669_v30 = vld [vmem:[#allocation31_spill] sm:$0xff] }
 0x2a3   : > { %v2174_v13 = vpop.eup %1354  ;;  %1374 = vpow2.f32 %v880_v56  ;;  %v953_v2 = vadd.f32 %v2158_v17, %v952_v0 }
 0x2a4   : > { %v2181_v53 = vpop.eup %1356  ;;  %1376 = vpow2.f32 %v884_v60 }
 0x2a5   : > { %v2189_v37 = vpop.eup %1358  ;;  %1378 = vpow2.f32 %v888_v46  ;;  %v954_v0 = vadd.f32 %v2166_v54, %v953_v2 }
 0x2a6   : > { %v2196_v29 = vpop.eup %1360  ;;  %1380 = vpow2.f32 %v892_v7 }
 0x2a7   : > { %v2204_v44 = vpop.eup %1362  ;;  %1382 = vpow2.f32 %v896_v63  ;;  %v955_v2 = vadd.f32 %v2174_v13, %v954_v0  ;;  %v2673_v0 = vsub.f32 %v2008_v8, %v2056_v15 }
 0x2a8   : > { %v2211_v36 = vpop.eup %1364  ;;  %1384 = vpow2.f32 %v900_v6  ;;  %v2674_v6 = vsub.f32 %v2014_v16, %v2056_v15 }
 0x2a9   : > { %v2219_v52 = vpop.eup %1366  ;;  %1386 = vpow2.f32 %v904_v27  ;;  %v920_v60 = vmul.f32 1.442695, %v2673_v0  ;;  %v956_v7 = vadd.f32 %v2181_v53, %v955_v2  ;;  %v2675_v27 = vsub.f32 %v2020_v19, %v2056_v15 }
 0x2aa   : > { %v2225_v40 = vpop.eup %1368  ;;  %1388 = vpow2.f32 %v2128_v11  ;;  %v924_v46 = vmul.f32 1.442695, %v2674_v6  ;;  %v2676_v11 = vsub.f32 %v2026_v4, %v2056_v15  ;;  %v2680_v4 = vsub.f32 %v2044_v34, %v2056_v15 }
 0x2ab   : > { %v2231_v56 = vpop.eup %1370  ;;  %1390 = vpow2.f32 %v2130_v22  ;;  %v928_v63 = vmul.f32 1.442695, %v2675_v27  ;;  %v957_v8 = vadd.f32 %v2189_v37, %v956_v7  ;;  %v2677_v22 = vsub.f32 %v2032_v21, %v2056_v15 }
 0x2ac   : > { %v2238_v0 = vpop.eup %1372  ;;  %1392 = vpow2.f32 %v2132_v24  ;;  %v932_v2 = vmul.f32 1.442695, %v2676_v11  ;;  %v2678_v7 = vsub.f32 %v2038_v50, %v2056_v15 }
 0x2ad   : > { %v2244_v16 = vpop.eup %1374  ;;  %1394 = vpow2.f32 %v920_v60  ;;  %v936_v6 = vmul.f32 1.442695, %v2677_v22  ;;  %v958_v19 = vadd.f32 %v2196_v29, %v957_v8  ;;  %v944_v60 = vmul.f32 1.442695, %v2680_v4 }
 0x2ae   : > { %v2250_v27 = vpop.eup %1376  ;;  %1396 = vpow2.f32 %v924_v46  ;;  %v940_v24 = vmul.f32 1.442695, %v2678_v7  ;;  %v2681_v8 = vsub.f32 %v2050_v12, %v2056_v15  ;;  %v2684_v15 = vsub.f32 %v1876_v28, %v2058_v1 }
 0x2af   : > { %v2255_v18 = vpop.eup %1378  ;;  %1398 = vpow2.f32 %v928_v63  ;;  %v959_v11 = vadd.f32 %v2204_v44, %v958_v19  ;;  %v2682_v63 = vsub.f32 %v1866_v23, %v2058_v1  ;;  %v2683_v19 = vsub.f32 %v1870_v25, %v2058_v1 }
 0x2b0   : > { %2679 = vst [vmem:[#allocation15_spill] sm:$0xff] %v2255_v18  ;;  %v2261_v21 = vpop.eup %1380  ;;  %1400 = vpow2.f32 %v932_v2  ;;  %v948_v46 = vmul.f32 1.442695, %v2681_v8  ;;  %v834_v12 = vmul.f32 1.442695, %v2684_v15  ;;  %v2685_v23 = vsub.f32 %v1884_v31, %v2058_v1 }
 0x2b1   : > { %v2266_v22 = vpop.eup %1382  ;;  %1402 = vpow2.f32 %v936_v6  ;;  %v960_v50 = vadd.f32 %v2211_v36, %v959_v11  ;;  %v826_v7 = vmul.f32 1.442695, %v2682_v63  ;;  %v830_v2 = vmul.f32 1.442695, %v2683_v19 }
 0x2b2   : > { %v2272_v34 = vpop.eup %1384  ;;  %1404 = vpow2.f32 %v940_v24  ;;  %v838_v11 = vmul.f32 1.442695, %v2685_v23  ;;  %v2686_v24 = vsub.f32 %v1891_v35, %v2058_v1  ;;  %v2687_v25 = vsub.f32 %v1897_v39, %v2058_v1 }
 0x2b3   : > { %v2280_v4 = vpop.eup %1386  ;;  %1406 = vpow2.f32 %v944_v60  ;;  %v961_v6 = vadd.f32 %v2219_v52, %v960_v50  ;;  %v2688_v60 = vsub.f32 %v1903_v43, %v2058_v1  ;;  %v2689_v50 = vsub.f32 %v1909_v47, %v2058_v1 }
 0x2b4   : > { %v842_v8 = vmul.f32 1.442695, %v2686_v24  ;;  %v2289_v63 = vpop.eup %1388  ;;  %1408 = vpow2.f32 %v948_v46  ;;  %v846_v28 = vmul.f32 1.442695, %v2687_v25  ;;  %v2690_v46 = vsub.f32 %v1915_v51, %v2058_v1 }
 0x2b5   : > { %v850_v19 = vmul.f32 1.442695, %v2688_v60  ;;  %v854_v31 = vmul.f32 1.442695, %v2689_v50  ;;  %v2300_v15 = vpop.eup %1390  ;;  %v962_v35 = vadd.f32 %v2225_v40, %v961_v6  ;;  %1410 = vpow2.f32 %v826_v7 }
 0x2b6   : > { %v858_v23 = vmul.f32 1.442695, %v2690_v46  ;;  %v2691_v39 = vsub.f32 %v1921_v55, %v2058_v1  ;;  %v2309_v25 = vpop.eup %1392  ;;  %1412 = vpow2.f32 %v830_v2 }
 0x2b7   : > { %v2317_v6 = vpop.eup %1394  ;;  %v963_v51 = vadd.f32 %v2231_v56, %v962_v35  ;;  %1414 = vpow2.f32 %v834_v12 }
 0x2b8   : > { %v862_v24 = vmul.f32 1.442695, %v2691_v39  ;;  %v2324_v60 = vpop.eup %1396  ;;  %1416 = vpow2.f32 %v838_v11  ;;  %v2692_v11 = vsub.f32 %v1927_v59, %v2058_v1  ;;  %v2693_v39 = vsub.f32 %v2653_v9, %v2058_v1 }
 0x2b9   : > { %v2332_v35 = vpop.eup %1398  ;;  %v964_v12 = vadd.f32 %v2238_v0, %v963_v51  ;;  %1418 = vpow2.f32 %v842_v8 }
 0x2ba   : > { %v2339_v55 = vpop.eup %1400  ;;  %1420 = vpow2.f32 %v846_v28  ;;  %v866_v2 = vmul.f32 1.442695, %v2692_v11  ;;  %v870_v46 = vmul.f32 1.442695, %v2693_v39 }
 0x2bb   : > { %v2347_v51 = vpop.eup %1402  ;;  %v965_v8 = vadd.f32 %v2244_v16, %v964_v12  ;;  %1422 = vpow2.f32 %v850_v19  ;;  %v2694_v19 = vsub.f32 %v2654_v20, %v2058_v1  ;;  %v2699_v20 = vsub.f32 %v2659_v3, %v2058_v1 }
 0x2bc   : > { %v2355_v7 = vpop.eup %1404  ;;  %1424 = vpow2.f32 %v854_v31  ;;  %v2695_v31 = vsub.f32 %v2655_v42, %v2058_v1  ;;  %v2698_v42 = vsub.f32 %v2658_v14, %v2058_v1  ;;  %v2702_v3 = vsub.f32 %v2662_v49, %v2058_v1 }
 0x2bd   : > { %v2360_v50 = vpop.eup %1406  ;;  %v966_v47 = vadd.f32 %v2250_v27, %v965_v8  ;;  %1426 = vpow2.f32 %v858_v23  ;;  %v874_v59 = vmul.f32 1.442695, %v2694_v19  ;;  %v2696_v23 = vsub.f32 %v2656_v58, %v2058_v1 }
 0x2be   : > { %v2368_v11 = vpop.eup %1408  ;;  %1428 = vpow2.f32 %v862_v24  ;;  %v878_v9 = vmul.f32 1.442695, %v2695_v31  ;;  %v2697_v24 = vsub.f32 %v2657_v5, %v2058_v1  ;;  %v890_v31 = vmul.f32 1.442695, %v2698_v42 }
 0x2bf   : > { %v1411_v39 = vpop.eup %1410  ;;  %v967_v28 = vadd.f32 %v2255_v18, %v966_v47  ;;  %1430 = vpow2.f32 %v866_v2  ;;  %v882_v8 = vmul.f32 1.442695, %v2696_v23  ;;  %v2700_v5 = vsub.f32 %v2660_v61, %v2058_v1 }
 0x2c0   : > { %v1413_v19 = vpop.eup %1412  ;;  %1432 = vpow2.f32 %v870_v46  ;;  %v886_v12 = vmul.f32 1.442695, %v2697_v24  ;;  %v894_v46 = vmul.f32 1.442695, %v2699_v20  ;;  %v906_v20 = vmul.f32 1.442695, %v2702_v3 }
 0x2c1   : > { %v1415_v43 = vpop.eup %1414  ;;  %v968_v47 = vadd.f32 %v2261_v21, %v967_v28  ;;  %1434 = vpow2.f32 %v874_v59  ;;  %v989_v2 = vadd.f32 %v1413_v19, %v1411_v39  ;;  %v1027_v58 = vpack.c.bf16 %v1413_v19, %v1411_v39 }
 0x2c2   : > { %v1417_v23 = vpop.eup %1416  ;;  %1436 = vpow2.f32 %v878_v9  ;;  %v898_v24 = vmul.f32 1.442695, %v2700_v5  ;;  %v2701_v9 = vsub.f32 %v2661_v62, %v2058_v1  ;;  %v2703_v61 = vpack.c.bf16 %v2150_v57, %v2142_v41 }
 0x2c3   : > { %v1419_v18 = vpop.eup %1418  ;;  %v969_v14 = vadd.f32 %v2266_v22, %v968_v47  ;;  %1438 = vpow2.f32 %v882_v8  ;;  %v990_v42 = vadd.f32 %v1415_v43, %v989_v2  ;;  %1058 = vmatprep.subr.bf16.mxu0 %v1027_v58  ;;  %v1029_v28 = vpack.c.bf16 %v1417_v23, %v1415_v43 }
 0x2c4   : > { %v1421_v59 = vpop.eup %1420  ;;  %1440 = vpow2.f32 %v886_v12  ;;  %v902_v39 = vmul.f32 1.442695, %v2701_v9  ;;  %1059 = vmatpush1.bf16.msra.mxu0 %v2703_v61  ;;  %v2704_v62 = vsub.f32 %v2663_v45, %v2058_v1  ;;  %v2705_v49 = vsub.f32 %v2664_v38, %v2058_v1  ;;  %v2710_v61 = vld [vmem:[#allocation30_spill] sm:$0xff] }
 0x2c5   : > { %v1423_v19 = vpop.eup %1422  ;;  %v970_v8 = vadd.f32 %v2272_v34, %v969_v14  ;;  %1442 = vpow2.f32 %v890_v31  ;;  %v991_v47 = vadd.f32 %v1417_v23, %v990_v42  ;;  %1060 = vmatprep.subr.bf16.mxu0 %v1029_v28  ;;  %v1031_v43 = vpack.c.bf16 %v1421_v59, %v1419_v18 }
 0x2c6   : > { %v1425_v12 = vpop.eup %1424  ;;  %1444 = vpow2.f32 %v894_v46  ;;  %v910_v2 = vmul.f32 1.442695, %v2704_v62  ;;  %v914_v58 = vmul.f32 1.442695, %v2705_v49  ;;  %v2706_v23 = vsub.f32 %v2665_v33, %v2058_v1 }
 0x2c7   : > { %v1427_v5 = vpop.eup %1426  ;;  %v971_v41 = vadd.f32 %v2280_v4, %v970_v8  ;;  %1446 = vpow2.f32 %v898_v24  ;;  %v992_v57 = vadd.f32 %v1419_v18, %v991_v47  ;;  %v1033_v14 = vpack.c.bf16 %v1425_v12, %v1423_v19 }
 0x2c8   : > { %v1429_v31 = vpop.eup %1428  ;;  %1448 = vpow2.f32 %v902_v39  ;;  %v918_v46 = vmul.f32 1.442695, %v2706_v23  ;;  %v2707_v45 = vsub.f32 %v2666_v10, %v2058_v1  ;;  %v2708_v38 = vpack.c.bf16 %v2166_v54, %v2158_v17 }
 0x2c9   : > { %v1431_v28 = vpop.eup %1430  ;;  %v972_v9 = vadd.f32 %v2289_v63, %v971_v41  ;;  %1450 = vpow2.f32 %v906_v20  ;;  %v993_v18 = vadd.f32 %v1421_v59, %v992_v57  ;;  %v1035_v24 = vpack.c.bf16 %v1429_v31, %v1427_v5 }
 0x2ca   : > { %v922_v42 = vmul.f32 1.442695, %v2707_v45  ;;  %1061 = vmatpush1.bf16.msra.mxu0 %v2708_v38  ;;  %v1433_v39 = vpop.eup %1432  ;;  %1452 = vpow2.f32 %v910_v2  ;;  %v2709_v33 = vsub.f32 %v2667_v26, %v2058_v1  ;;  %v2711_v10 = vsub.f32 %v2710_v61, %v2058_v1  ;;  %v2713_v2 = vld [vmem:[#allocation32_spill] sm:$0xff] }
 0x2cb   : > { %1062 = vmatprep.subr.bf16.mxu0 %v1031_v43  ;;  %v1435_v47 = vpop.eup %1434  ;;  %v973_v17 = vadd.f32 %v2300_v15, %v972_v9  ;;  %1454 = vpow2.f32 %v914_v58  ;;  %v994_v54 = vadd.f32 %v1423_v19, %v993_v18  ;;  %v1037_v62 = vpack.c.bf16 %v1433_v39, %v1431_v28 }
 0x2cc   : > { %v926_v3 = vmul.f32 1.442695, %v2709_v33  ;;  %v930_v8 = vmul.f32 1.442695, %v2711_v10  ;;  %v1437_v20 = vpop.eup %1436  ;;  %1456 = vpow2.f32 %v918_v46  ;;  %v2712_v59 = vsub.f32 %v2669_v30, %v2058_v1 }
 0x2cd   : > { %v2714_v26 = vsub.f32 %v2713_v2, %v2058_v1  ;;  %v2715_v41 = vpack.c.bf16 %v2181_v53, %v2174_v13  ;;  %v1439_v57 = vpop.eup %1438  ;;  %v974_v23 = vadd.f32 %v2309_v25, %v973_v17  ;;  %1458 = vpow2.f32 %v922_v42 }
 0x2ce   : > { %v934_v43 = vmul.f32 1.442695, %v2712_v59  ;;  %v995_v19 = vadd.f32 %v1425_v12, %v994_v54  ;;  %v1039_v58 = vpack.c.bf16 %v1437_v20, %v1435_v47  ;;  %v1441_v46 = vpop.eup %1440  ;;  %1460 = vpow2.f32 %v926_v3  ;;  %v2718_v12 = vld [vmem:[#allocation35_spill] sm:$0xff] }
 0x2cf   : > { %v938_v49 = vmul.f32 1.442695, %v2714_v26  ;;  %1063 = vmatpush1.bf16.msra.mxu0 %v2715_v41  ;;  %v2716_v30 = vsub.f32 %v2671_v48, %v2058_v1  ;;  %v2717_v38 = vsub.f32 %v2672_v32, %v2058_v1  ;;  %v1443_v18 = vpop.eup %1442  ;;  %v975_v53 = vadd.f32 %v2317_v6, %v974_v23 }
 0x2d0   : > { %1064 = vmatprep.subr.bf16.mxu0 %v1033_v14  ;;  %1462 = vpow2.f32 %v930_v8  ;;  %v996_v13 = vadd.f32 %v1427_v5, %v995_v19  ;;  %v1041_v33 = vpack.c.bf16 %v1441_v46, %v1439_v57  ;;  %v1445_v42 = vpop.eup %1444  ;;  %v2719_v14 = vsub.f32 %v2718_v12, %v2058_v1 }
 0x2d1   : > { %v942_v45 = vmul.f32 1.442695, %v2716_v30  ;;  %v946_v9 = vmul.f32 1.442695, %v2717_v38  ;;  %1464 = vpow2.f32 %v934_v43  ;;  %v2720_v48 = vpack.c.bf16 %v2196_v29, %v2189_v37  ;;  %v1447_v61 = vpop.eup %1446 }
 0x2d2   : > { %v950_v3 = vmul.f32 1.442695, %v2719_v14  ;;  %v976_v32 = vadd.f32 %v2324_v60, %v975_v53  ;;  %1466 = vpow2.f32 %v938_v49  ;;  %v997_v10 = vadd.f32 %v1429_v31, %v996_v13  ;;  %v1449_v8 = vpop.eup %1448 }
 0x2d3   : > { %1065 = vmatpush1.bf16.msra.mxu0 %v2720_v48  ;;  %v1043_v17 = vpack.c.bf16 %v1445_v42, %v1443_v18  ;;  %1468 = vpow2.f32 %v942_v45  ;;  %v1451_v5 = vpop.eup %1450  ;;  %v1045_v1 = vpack.c.bf16 %v1449_v8, %v1447_v61  ;;  %v2721_v29 = vpack.c.bf16 %v2211_v36, %v2204_v44 }
 0x2d4   : > { %1066 = vmatprep.subr.bf16.mxu0 %v1035_v24  ;;  %v977_v54 = vadd.f32 %v2332_v35, %v976_v32  ;;  %1470 = vpow2.f32 %v946_v9  ;;  %v998_v59 = vadd.f32 %v1431_v28, %v997_v10  ;;  %v1453_v43 = vpop.eup %1452  ;;  %v2722_v30 = vpack.c.bf16 %v2225_v40, %v2219_v52 }
 0x2d5   : > { %1472 = vpow2.f32 %v950_v3  ;;  %v1455_v37 = vpop.eup %1454  ;;  %v1047_v24 = vpack.c.bf16 %v1453_v43, %v1451_v5  ;;  %v2724_v32 = vpack.c.bf16 %v2250_v27, %v2244_v16  ;;  %v2728_v16 = vpack.c.bf16 %v2289_v63, %v2280_v4 }
 0x2d6   : > { %v978_v2 = vadd.f32 %v2339_v55, %v977_v54  ;;  %v999_v31 = vadd.f32 %v1433_v39, %v998_v59  ;;  %v1457_v26 = vpop.eup %1456  ;;  %v2725_v54 = vld [vmem:[#allocation15_spill] sm:$0xff]  ;;  %v2731_v4 = vpack.c.bf16 %v2339_v55, %v2332_v35  ;;  %v2738_v55 = vld [vmem:[#allocation13_spill] sm:$0xff] }
 0x2d7   : > { %1067 = vmatpush1.bf16.msra.mxu0 %v2721_v29  ;;  %v1459_v49 = vpop.eup %1458  ;;  %v1049_v19 = vpack.c.bf16 %v1457_v26, %v1455_v37  ;;  %v2737_v29 = vld [vmem:[#allocation14_spill] sm:$0xff] }
 0x2d8   : > { %1068 = vmatprep.subr.bf16.mxu0 %v1037_v62  ;;  %v979_v41 = vadd.f32 %v2347_v51, %v978_v2  ;;  %v1000_v23 = vadd.f32 %v1435_v47, %v999_v31  ;;  %v1461_v28 = vpop.eup %1460  ;;  %v2723_v47 = vpack.c.bf16 %v2238_v0, %v2231_v56  ;;  %v2726_v56 = vpack.c.bf16 %v2261_v21, %v2725_v54  ;;  %v2741_v2 = vld [vmem:[#allocation11_spill] sm:$0xff] }
 0x2d9   : > { %v1051_v38 = vpack.c.bf16 %v1461_v28, %v1459_v49  ;;  %v2729_v21 = vpack.c.bf16 %v2309_v25, %v2300_v15  ;;  %v2732_v15 = vpack.c.bf16 %v2355_v7, %v2347_v51  ;;  %v2739_v35 = vpack.c.bf16 %v2737_v29, %v2738_v55 }
 0x2da   : > { %v1463_v45 = vpop.eup %1462  ;;  %v980_v36 = vadd.f32 %v2355_v7, %v979_v41  ;;  %v1001_v44 = vadd.f32 %v1437_v20, %v1000_v23 }
 0x2db   : > { %1069 = vmatpush1.bf16.msra.mxu0 %v2722_v30  ;;  %v1465_v39 = vpop.eup %1464 }
 0x2dc   : > { %1070 = vmatprep.subr.bf16.mxu0 %v1039_v58  ;;  %v1467_v62 = vpop.eup %1466  ;;  %v981_v9 = vadd.f32 %v2360_v50, %v980_v36  ;;  %v1002_v53 = vadd.f32 %v1439_v57, %v1001_v44  ;;  %v1053_v13 = vpack.c.bf16 %v1465_v39, %v1463_v45  ;;  %v1121_v44 = vstv %s218_s26 }
 0x2dd   : > { %v1469_v12 = vpop.eup %1468 }
 0x2de   : > { %v1471_v14 = vpop.eup %1470  ;;  %v982_v40 = vadd.f32 %v2368_v11, %v981_v9  ;;  %v1003_v52 = vadd.f32 %v1441_v46, %v1002_v53  ;;  %v1055_v3 = vpack.c.bf16 %v1469_v12, %v1467_v62  ;;  %v2727_v46 = vpack.c.bf16 %v2272_v34, %v2266_v22 }
 0x2df   : > { %1071 = vmatpush1.bf16.msra.mxu0 %v2723_v47  ;;  %v1473_v20 = vpop.eup %1472  ;;  %v2730_v22 = vpack.c.bf16 %v2324_v60, %v2317_v6  ;;  %v2733_v6 = vpack.c.bf16 %v2368_v11, %v2360_v50  ;;  %v2734_v60 = vld [vmem:[#allocation10_spill] sm:$0xff] }
 0x2e0   : > { %1072 = vmatprep.subr.bf16.mxu0 %v1041_v33  ;;  %v1004_v58 = vadd.f32 %v1443_v18, %v1003_v52  ;;  %v1057_v48 = vpack.c.bf16 %v1473_v20, %v1471_v14  ;;  %v983_v7 = vrot.slane %v982_v40, 4  ;;  %v1479_v52 = vld [vmem:[%s1722_s16 + $0x8] sm:$0xff] }
 0x2e2   : > { %v1005_v57 = vadd.f32 %v1445_v42, %v1004_v58 }
 0x2e3   : > { %1073 = vmatpush1.bf16.msra.mxu0 %v2724_v32  ;;  %v1133_v32 = vunpack.c.h.bf16 %v1479_v52 }
 0x2e4   : > { %1074 = vmatprep.subr.bf16.mxu0 %v1043_v17  ;;  %v1006_v10 = vadd.f32 %v1447_v61, %v1005_v57 }
 0x2e6   : > { %v1007_v0 = vadd.f32 %v1449_v8, %v1006_v10 }
 0x2e7   : > { %1075 = vmatpush1.bf16.msra.mxu0 %v2726_v56 }
 0x2e8   : > { %1076 = vmatprep.subr.bf16.mxu0 %v1045_v1  ;;  %v1008_v59 = vadd.f32 %v1451_v5, %v1007_v0  ;;  %v2735_v1 = vld [vmem:[#allocation9_spill] sm:$0xff] }
 0x2ea   : > { %v1009_v18 = vadd.f32 %v1453_v43, %v1008_v59  ;;  %v2736_v43 = vpack.c.bf16 %v2734_v60, %v2735_v1 }
 0x2eb   : > { %1077 = vmatpush1.bf16.msra.mxu0 %v2727_v46 }
 0x2ec   : > { %1078 = vmatprep.subr.bf16.mxu0 %v1047_v24  ;;  %v1010_v33 = vadd.f32 %v1455_v37, %v1009_v18  ;;  %v2740_v37 = vld [vmem:[#allocation12_spill] sm:$0xff]  ;;  %v984_v24 = vadd.f32 %v983_v7, %v982_v40 }
 0x2ed   : > { %v2742_v31 = vpack.c.bf16 %v2740_v37, %v2741_v2 }
 0x2ee   : > { %v1011_v27 = vadd.f32 %v1457_v26, %v1010_v33  ;;  %v1480_v33 = vld [vmem:[%s1722_s16 + $0x10] sm:$0xff] }
 0x2ef   : > { %1079 = vmatpush1.bf16.msra.mxu0 %v2728_v16  ;;  %v1134_v16 = vunpack.c.l.bf16 %v1480_v33 }
 0x2f0   : > { %1080 = vmatprep.subr.bf16.mxu0 %v1049_v19  ;;  %v1012_v42 = vadd.f32 %v1459_v49, %v1011_v27  ;;  %v985_v49 = vrot.slane %v984_v24, 2 }
 0x2f2   : > { %v1013_v61 = vadd.f32 %v1461_v28, %v1012_v42  ;;  %v986_v11 = vadd.f32 %v985_v49, %v984_v24 }
 0x2f3   : > { %1081 = vmatpush1.bf16.msra.mxu0 %v2729_v21  ;;  %v1135_v21 = vunpack.c.h.bf16 %v1480_v33 }
 0x2f4   : > { %1082 = vmatprep.subr.bf16.mxu0 %v1051_v38  ;;  %v1014_v17 = vadd.f32 %v1463_v45, %v1013_v61  ;;  %v987_v23 = vrot.slane %v986_v11, 1 }
 0x2f6   : > { %v1015_v34 = vadd.f32 %v1465_v39, %v1014_v17  ;;  %v988_v28 = vadd.f32 %v987_v23, %v986_v11 }
 0x2f7   : > { %1083 = vmatpush1.bf16.msra.mxu0 %v2730_v22 }
 0x2f8   : > { %1084 = vmatprep.subr.bf16.mxu0 %v1053_v13  ;;  %v1016_v8 = vadd.f32 %v1467_v62, %v1015_v34  ;;  %1474 = vrcp.f32 %v988_v28  ;;  %v1478_v62 = vld [vmem:[%s1722_s16] sm:$0xff]  ;;  %v1481_v34 = vld [vmem:[%s1722_s16 + $0x18] sm:$0xff] }
 0x2f9   : > { %v1130_v9 = vunpack.c.l.bf16 %v1478_v62 }
 0x2fa   : > { %v1017_v63 = vadd.f32 %v1469_v12, %v1016_v8  ;;  %v1131_v12 = vunpack.c.h.bf16 %v1478_v62  ;;  %v1136_v8 = vunpack.c.l.bf16 %v1481_v34 }
 0x2fb   : > { %1085 = vmatpush1.bf16.msra.mxu0 %v2731_v4 }
 0x2fc   : > { %1086 = vmatprep.subr.bf16.mxu0 %v1055_v3  ;;  %v1018_v5 = vadd.f32 %v1471_v14, %v1017_v63  ;;  %v1132_v3 = vunpack.c.l.bf16 %v1479_v52 }
 0x2fe   : > { %v1019_v25 = vadd.f32 %v1473_v20, %v1018_v5 }
 0x2ff   : > { %1087 = vmatpush1.bf16.msra.mxu0 %v2732_v15  ;;  %v1137_v15 = vunpack.c.h.bf16 %v1481_v34 }
 0x300   : > { %1088 = vmatprep.subr.bf16.mxu0 %v1057_v48  ;;  %v1020_v51 = vrot.slane %v1019_v25, 4 }
 0x302   : > { %v1021_v26 = vadd.f32 %v1020_v51, %v1019_v25  ;;  %v1475_v45 = vpop.eup %1474 }
 0x303   : > { %1089 = vmatpush1.bf16.msra.mxu0 %v2733_v6 }
 0x304   : > { %v1022_v50 = vrot.slane %v1021_v26, 2 }
 0x306   : > { %1091 = vmatmul.mubr.bf16.vlgmr.msra.gmra.mrb[16].mxu0 %v2736_v43  ;;  %v1023_v41 = vadd.f32 %v1022_v50, %v1021_v26 }
 0x307   : > { %1100 = vmatprep.mubr.bf16.mxu0 %v2739_v35 }
 0x308   : > { %v1024_v19 = vrot.slane %v1023_v41, 1 }
 0x30a   : > { %v1025_v30 = vadd.f32 %v1024_v19, %v1023_v41 }
 0x30c   : > { %1476 = vrcp.f32 %v1025_v30 }
 0x30e   : > { %1101 = vmatmul.mubr.bf16.gmra.mrb[20].mxu0 %v2742_v31 }
 0x316   : > { %v1477_v38 = vpop.eup %1476 }
 0x3d9   : > { %v1092_v36 = vpop.f32.mrb[16].mxu0 }
 0x3da   : > { %v1113_v39 = vmul.f32 %v1475_v45, %v1092_v36  ;;  %v1094_v53 = vpop.f32.mrb[17].mxu0 }
 0x3db   : > { %v1114_v13 = vmul.f32 %v1477_v38, %v1094_v53  ;;  %v1096_v47 = vpop.f32.mrb[18].mxu0 }
 0x3dc   : > { %v1122_v14 = vmul.f32 %v1121_v44, %v1113_v39  ;;  %v1115_v40 = vmul.f32 %v1475_v45, %v1096_v47  ;;  %v1098_v20 = vpop.f32.mrb[19].mxu0 }
 0x3dd   : > { %v1123_v58 = vmul.f32 %v1121_v44, %v1114_v13  ;;  %v1116_v48 = vmul.f32 %v1477_v38, %v1098_v20 }
 0x3de   : > { %v1138_v57 = vadd.f32 %v1130_v9, %v1122_v14  ;;  %v1124_v10 = vmul.f32 %v1121_v44, %v1115_v40 }
 0x3df   : > { %v1139_v54 = vadd.f32 %v1131_v12, %v1123_v58  ;;  %v1125_v56 = vmul.f32 %v1121_v44, %v1116_v48 }
 0x3e0   : > { %1146 = vst [vmem:[%s2505_s5] sm:$0xff] %v1138_v57  ;;  %v1140_v0 = vadd.f32 %v1132_v3, %v1124_v10 }
 0x3e1   : > { %1147 = vst [vmem:[%s2505_s5 + $0x8] sm:$0xff] %v1139_v54  ;;  %v1141_v59 = vadd.f32 %v1133_v32, %v1125_v56  ;;  %v1102_v46 = vpop.f32.mrb[20].mxu0 }
 0x3e2   : > { %1148 = vst [vmem:[%s2505_s5 + $0x10] sm:$0xff] %v1140_v0  ;;  %v1117_v18 = vmul.f32 %v1475_v45, %v1102_v46  ;;  %v1104_v27 = vpop.f32.mrb[21].mxu0 }
 0x3e3   : > { %1149 = vst [vmem:[%s2505_s5 + $0x18] sm:$0xff] %v1141_v59  ;;  %v1118_v42 = vmul.f32 %v1477_v38, %v1104_v27  ;;  %v1106_v61 = vpop.f32.mrb[22].mxu0 }
 0x3e4   : > { %v1126_v17 = vmul.f32 %v1121_v44, %v1117_v18  ;;  %v1119_v22 = vmul.f32 %v1475_v45, %v1106_v61  ;;  %v1108_v4 = vpop.f32.mrb[23].mxu0 }
 0x3e5   : > { %v1127_v63 = vmul.f32 %v1121_v44, %v1118_v42  ;;  %v1120_v5 = vmul.f32 %v1477_v38, %v1108_v4 }
 0x3e6   : > { %v1142_v25 = vadd.f32 %v1134_v16, %v1126_v17  ;;  %v1128_v6 = vmul.f32 %v1121_v44, %v1119_v22 }
 0x3e7   : > { %v1143_v60 = vadd.f32 %v1135_v21, %v1127_v63  ;;  %v1129_v1 = vmul.f32 %v1121_v44, %v1120_v5 }
 0x3e8   : > { %1150 = vst [vmem:[%s2505_s5 + $0x20] sm:$0xff] %v1142_v25  ;;  %v1144_v43 = vadd.f32 %v1136_v8, %v1128_v6 }
 0x3e9   : > { %1151 = vst [vmem:[%s2505_s5 + $0x28] sm:$0xff] %v1143_v60  ;;  %v1145_v29 = vadd.f32 %v1137_v15, %v1129_v1 }
 0x3ea   : > { %1152 = vst [vmem:[%s2505_s5 + $0x30] sm:$0xff] %v1144_v43 }
 0x3eb   : > { %1153 = vst [vmem:[%s2505_s5 + $0x38] sm:$0xff] %v1145_v29 }
 0x3ec   : > { %1525 = shalt.err (!%p1522_p1)
}
 0x3ed   : > { %s1526_s12 = scalar_lea.hbm %s2519_s14, 1024  ;;  %s1530_s23 = scalar_lea.hbm %s2571_s4, 4096 }
 0x3ee   : > { %p1527_p3 = scmp.ne.s32.totalorder %s2519_s14, %s1526_s12  ;;  %p1531_p0 = scmp.lt.u32.totalorder %s2519_s14, %s2571_s4 }
 0x3ef   : > { %p1532_p2 = scmp.lt.u32.totalorder %s1530_s23, %s1526_s12  ;;  %p1534_p6 = scmp.lt.u32.totalorder %s1526_s12, %s2519_s14 }
 0x3f0   : > { %p1528_p4 = pnand %p1527_p3, %p2743_p10 }
 0x3f1   : > { %p1533_p7 = por %p1532_p2, %p1531_p0 }
 0x3f2   : > { %p1529_p5 = pneg %p1528_p4 }
 0x3f3   : > { %p1535_p11 = por %p1534_p6, %p1533_p7 }
 0x3f5   : > { %p1536_p12 = pnand %p1535_p11, %p1529_p5 }
 0x3f7   : > { %1539 = shalt.err (!%p1536_p12)
}
 0x3f8   : > { %s1585_s30 = smov 256   ;;  %s1586_s5 = smov 16  }
 0x3f9   : > { %1287 = dma.vmem_to_hbm [thread:$0]  (%p2743_p10), %s2521_s7, 1024, %s2519_s14, %s1155_s0, %s1585_s30, %s1585_s30, %s1586_s5  }
 0x3fa PF: > { %p1298_p8 = scmp.ge.s32.totalorder %s1578_s20, 2  ;;  %s1183_s6 = sand.u32 1, %s1566_s17  }
 0x3fb   : > { %p2744_p9 = scmp.ne.s32.totalorder %s2624_s29, 0  ;;  %s1184_s8 = scalar_lea.sflag [#allocation5], %s1183_s6 }
 0x3fd   : > { %p1294_p13 = pnand %p1298_p8, %p2744_p9 }
 0x3ff   : > { %1561 = dma.done.wait (!%p1294_p13), %s1184_s8, 1024  }
 0x400   : > { %1563 = vsyncadd (!%p1294_p13), %s1184_s8, 4294966272  ;;  %p18_p1 = scmp.ge.s32.totalorder %s1640_s22, 6   ;;  %s2745_s17 = smov %s1570_s18 }
 0x401   : > { %s2746_s18 = smov %s1574_s19  ;;  %s2747_s19 = smov %s1652_s25 }
 0x402   : > { %s2748_s20 = smov %s1640_s22  ;;  %20 = sbr.rel (!%p18_p1) target bundleno = 7 (0x7), region = 81 }
 0x409   :  { %1189 = vsyncpa [#allocation4], 1 }
 0x40a   :  { %1191 = vsyncpa [#allocation4 + $0x1], 1 }
 0x40b   :  { %1192 = vsyncpa [#allocation5], 1 }
 0x40c   :  { %1194 = vsyncpa [#allocation5 + $0x1], 1 }

</bundles_post_ra>
